<compile_context>
chip_gen: v7x
topology: tpu7x:2x2x1
jax: 0.10.0
libtpu: 0.0.40
codegen_flags: <defaults>
</compile_context>

<pallas_src>
import functools
import math

import jax
import jax.numpy as jnp
import numpy as np
from jax.experimental import pallas as pl
from jax.experimental.pallas import tpu as pltpu


def _round_up(a, b):
    return (a + b - 1) // b * b


def _largest_divisor_tile(dim, candidates):
    for c in candidates:
        if dim % c == 0:
            return c
    return dim


def _dense_kernel(x_ref, w_ref, b_ref, o_ref, acc_ref, *, wscale, alpha,
                  add_bias):
    """One (tm, tn) output tile; K axis (grid dim 2) is the reduction."""
    k = pl.program_id(2)

    @pl.when(k == 0)
    def _():
        acc_ref[...] = jnp.zeros_like(acc_ref)

    # x tile (tm, tk) @ w tile (tk, tn) -> f32 accumulate on the MXU.
    acc_ref[...] += jnp.dot(x_ref[...], w_ref[...],
                            preferred_element_type=jnp.float32)

    @pl.when(k == pl.num_programs(2) - 1)
    def _():
        # gain is already folded into wscale (and into the pre-scaled bias).
        acc = acc_ref[...] * wscale
        if add_bias:
            acc = acc + b_ref[...]
        if alpha is not None:  # lrelu / relu
            acc = jnp.where(acc >= 0.0, acc, acc * alpha)
        o_ref[...] = acc.astype(o_ref.dtype)


def dense_layer_forward(x, weight, bias, *, use_wscale, wscale_gain, lr_mul,
                        add_bias, activation_type, mxu_dtype=None):
    """Pallas implementation of DenseLayer.forward.

    mxu_dtype: optionally cast x / weight (e.g. jnp.bfloat16 on v6e/v7x) for
    MXU throughput while keeping f32 accumulation. Default: input dtype.
    """
    out_dtype = x.dtype
    if x.ndim != 2:
        x = x.reshape(x.shape[0], -1)
    M, K = x.shape
    N, K_w = weight.shape
    assert K_w == K

    wscale_base = wscale_gain / math.sqrt(K)
    wscale = wscale_base * lr_mul if use_wscale else lr_mul
    bscale = lr_mul

    if activation_type == 'linear':
        alpha, gain = None, 1.0
    elif activation_type == 'lrelu':
        alpha, gain = 0.2, math.sqrt(2.0)
    elif activation_type == 'relu':
        alpha, gain = 0.0, math.sqrt(2.0)
    else:
        # TODO(synk): other bias_act activation types (tanh, sigmoid, ...) not wired up.
        raise NotImplementedError(activation_type)

    # Positive homogeneity (gain > 0): gain*act(s*z + b) == act(gain*s*z + gain*b).
    wscale_f = float(wscale * gain)
    bscale_f = float(bscale * gain)

    in_dtype = mxu_dtype if mxu_dtype is not None else out_dtype

    # ---- padding / tile selection (lane-dense, 128-granular K/N) ----------
    K_p = _round_up(K, 128)
    N_p = _round_up(N, 128)
    M_p = _round_up(M, 8)
    if M_p % 128 != 0 and M_p > 512:
        M_p = _round_up(M, 128)

    tk = _largest_divisor_tile(K_p, (512, 256, 128))
    tn = _largest_divisor_tile(N_p, (512, 256, 128))
    if M_p % 128 == 0:
        tm = _largest_divisor_tile(M_p, (256, 128))
    else:
        tm = M_p  # small batch: a single sublane-aligned M block

    # One-time layout plumbing outside the hot path: (N, K) -> (K, N), pad.
    x_pad = jnp.pad(x.astype(in_dtype), ((0, M_p - M), (0, K_p - K)))
    w_pad = jnp.pad(weight.astype(in_dtype).T, ((0, K_p - K), (0, N_p - N)))

    if bias is None or not add_bias:
        bias2d = jnp.zeros((1, N_p), jnp.float32)
    else:
        bias2d = jnp.pad(bias.astype(jnp.float32) * bscale_f,
                         ((0, N_p - N),)).reshape(1, N_p)

    grid = (M_p // tm, N_p // tn, K_p // tk)

    kernel = functools.partial(_dense_kernel, wscale=wscale_f, alpha=alpha,
                               add_bias=bool(add_bias))

    in_bytes = jnp.dtype(in_dtype).itemsize
    out_bytes = jnp.dtype(out_dtype).itemsize
    # double-buffered x/w/bias tiles + double-buffered out tile + f32 acc
    footprint = (2 * (tm * tk + tk * tn + tn) * in_bytes
                 + 2 * tm * tn * out_bytes + tm * tn * 4)
    vmem_limit = int(min(64 * 1024 * 1024,
                         max(4 * footprint, 8 * 1024 * 1024)))

    cost = pl.CostEstimate(
        flops=2 * M_p * N_p * K_p,
        transcendentals=0,
        bytes_accessed=(M_p * K_p * in_bytes + K_p * N_p * in_bytes
                        + N_p * 4 + M_p * N_p * out_bytes))

    out = pl.pallas_call(
        kernel,
        out_shape=jax.ShapeDtypeStruct((M_p, N_p), out_dtype),
        grid_spec=pltpu.PrefetchScalarGridSpec(
            num_scalar_prefetch=0,
            grid=grid,
            in_specs=[
                pl.BlockSpec((tm, tk), lambda i, j, k: (i, k)),   # x
                pl.BlockSpec((tk, tn), lambda i, j, k: (k, j)),   # weight (K,N)
                pl.BlockSpec((1, tn), lambda i, j, k: (0, j)),    # bias
            ],
            out_specs=pl.BlockSpec((tm, tn), lambda i, j, k: (i, j)),
            scratch_shapes=[pltpu.VMEM((tm, tn), jnp.float32)],
        ),
        compiler_params=pltpu.CompilerParams(
            dimension_semantics=("parallel", "parallel", "arbitrary"),
            vmem_limit_bytes=vmem_limit),
        cost_estimate=cost,
    )(x_pad, w_pad, bias2d)

    return out[:M, :N]


def _reference(x, weight, bias, *, use_wscale, wscale_gain, lr_mul, add_bias,
               activation_type):
    if x.ndim != 2:
        x = x.reshape(x.shape[0], -1)
    K = x.shape[1]
    wscale_base = wscale_gain / math.sqrt(K)
    wscale = wscale_base * lr_mul if use_wscale else lr_mul
    w = weight * wscale
    y = x @ w.T
    if add_bias:
        y = y + bias[None, :] * lr_mul
    if activation_type == 'lrelu':
        y = jnp.where(y >= 0, y, y * 0.2) * math.sqrt(2.0)
    elif activation_type == 'relu':
        y = jnp.maximum(y, 0.0) * math.sqrt(2.0)
    return y


if __name__ == "__main__":
    # StyleGAN2 mapping-network style dense layer (small but multi-tile:
    # K pads to 384 -> 3 K-steps, N pads to 384 -> 3 N-blocks).
    in_channels = 320
    out_channels = 320
    batch = 16
    add_bias = True
    init_bias = 0.0
    use_wscale = True
    wscale_gain = 1.0
    lr_mul = 0.01
    activation_type = 'lrelu'

    key = jax.random.PRNGKey(0)
    kx, kw = jax.random.split(key)

    # Deterministic parameter init mirroring __init__:
    #   use_wscale=True -> weight = randn(out, in) / lr_mul
    #   bias = full(out, init_bias / lr_mul)
    x = jax.random.normal(kx, (batch, in_channels), dtype=jnp.float32)
    weight = jax.random.normal(kw, (out_channels, in_channels),
                               dtype=jnp.float32) / lr_mul
    bias = jnp.full((out_channels,), np.float32(init_bias) / lr_mul,
                    dtype=jnp.float32)

    out = dense_layer_forward(
        x, weight, bias,
        use_wscale=use_wscale, wscale_gain=wscale_gain, lr_mul=lr_mul,
        add_bias=add_bias, activation_type=activation_type)
    out = jax.block_until_ready(out)

    ref = _reference(
        x, weight, bias,
        use_wscale=use_wscale, wscale_gain=wscale_gain, lr_mul=lr_mul,
        add_bias=add_bias, activation_type=activation_type)
    np.testing.assert_allclose(np.asarray(out), np.asarray(ref),
                               rtol=2e-4, atol=2e-4)
    assert out.shape == (batch, out_channels) and out.dtype == x.dtype

    print("KERNEL_OK")
</pallas_src>

<mosaic_0001>
module attributes {stable_mosaic.version = 11 : i64} {
  func.func @_dense_kernel(%arg0: i32, %arg1: i32, %arg2: i32, %arg3: memref<16x128xf32, #tpu.memory_space<vmem>>, %arg4: memref<128x128xf32, #tpu.memory_space<vmem>>, %arg5: memref<1x128xf32, #tpu.memory_space<vmem>>, %arg6: memref<16x128xf32, #tpu.memory_space<vmem>>, %arg7: memref<16x128xf32, #tpu.memory_space<vmem>>) attributes {dimension_semantics = [#tpu.dimension_semantics<parallel>, #tpu.dimension_semantics<parallel>, #tpu.dimension_semantics<arbitrary>], iteration_bounds = array<i64: 1, 3, 3>, scalar_prefetch = 0 : i64, scratch_operands = 1 : i64, tpu.core_type = #tpu.core_type<tc>, window_params = [{transform_indices = @transform_0, window_bounds = array<i64: 16, 128>}, {transform_indices = @transform_1, window_bounds = array<i64: 128, 128>}, {transform_indices = @transform_2, window_bounds = array<i64: 1, 128>}, {transform_indices = @transform_3, window_bounds = array<i64: 16, 128>}]} {
    %c0_i32 = arith.constant 0 : i32
    %0 = arith.cmpi eq, %arg2, %c0_i32 : i32
    %1 = arith.extui %0 : i1 to i32
    %c0_i32_0 = arith.constant 0 : i32
    %2 = arith.cmpi ne, %1, %c0_i32_0 : i32
    scf.if %2 {
      %cst_9 = arith.constant 0.000000e+00 : f32
      %12 = vector.broadcast %cst_9 : f32 to vector<16x128xf32>
      %c0_10 = arith.constant 0 : index
      %c0_11 = arith.constant 0 : index
      %13 = vector.load %arg7[%c0_10, %c0_11] : memref<16x128xf32, #tpu.memory_space<vmem>>, vector<16x128xf32>
      tpu.vector_store %arg7[%c0_10, %c0_11], %12 {strides = array<i32>} : memref<16x128xf32, #tpu.memory_space<vmem>>, vector<16x128xf32>,
    } else {
    }
    %c0 = arith.constant 0 : index
    %c0_1 = arith.constant 0 : index
    %3 = vector.load %arg7[%c0, %c0_1] : memref<16x128xf32, #tpu.memory_space<vmem>>, vector<16x128xf32>
    %c0_2 = arith.constant 0 : index
    %c0_3 = arith.constant 0 : index
    %4 = vector.load %arg3[%c0_2, %c0_3] : memref<16x128xf32, #tpu.memory_space<vmem>>, vector<16x128xf32>
    %c0_4 = arith.constant 0 : index
    %c0_5 = arith.constant 0 : index
    %5 = vector.load %arg4[%c0_4, %c0_5] : memref<128x128xf32, #tpu.memory_space<vmem>>, vector<128x128xf32>
    %cst = arith.constant dense<0.000000e+00> : vector<16x128xf32>
    %6 = tpu.matmul %4, %5, %cst {dimension_numbers = #tpu.dot_dimension_numbers<[1], [0], [0], [1], [0, 0, 1, 1], [], []>} : vector<16x128xf32>, vector<128x128xf32>, vector<16x128xf32> -> vector<16x128xf32>
    %7 = arith.addf %3, %6 : vector<16x128xf32>
    %c0_6 = arith.constant 0 : index
    %c0_7 = arith.constant 0 : index
    %8 = vector.load %arg7[%c0_6, %c0_7] : memref<16x128xf32, #tpu.memory_space<vmem>>, vector<16x128xf32>
    tpu.vector_store %arg7[%c0_6, %c0_7], %7 {strides = array<i32>} : memref<16x128xf32, #tpu.memory_space<vmem>>, vector<16x128xf32>,
    %c2_i32 = arith.constant 2 : i32
    %9 = arith.cmpi eq, %arg2, %c2_i32 : i32
    %10 = arith.extui %9 : i1 to i32
    %c0_i32_8 = arith.constant 0 : i32
    %11 = arith.cmpi ne, %10, %c0_i32_8 : i32
    scf.if %11 {
      %c0_9 = arith.constant 0 : index
      %c0_10 = arith.constant 0 : index
      %12 = vector.load %arg7[%c0_9, %c0_10] : memref<16x128xf32, #tpu.memory_space<vmem>>, vector<16x128xf32>
      %cst_11 = arith.constant 7.90569407E-4 : f32
      %13 = vector.broadcast %cst_11 : f32 to vector<16x128xf32>
      %14 = arith.mulf %12, %13 : vector<16x128xf32>
      %c0_12 = arith.constant 0 : index
      %c0_13 = arith.constant 0 : index
      %15 = vector.load %arg5[%c0_12, %c0_13] : memref<1x128xf32, #tpu.memory_space<vmem>>, vector<1x128xf32>
      %16 = vector.broadcast %15 : vector<1x128xf32> to vector<16x128xf32>
      %17 = arith.addf %14, %16 : vector<16x128xf32>
      %cst_14 = arith.constant 0.000000e+00 : f32
      %18 = vector.broadcast %cst_14 : f32 to vector<16x128xf32>
      %19 = arith.cmpf oge, %17, %18 : vector<16x128xf32>
      %cst_15 = arith.constant 2.000000e-01 : f32
      %20 = vector.broadcast %cst_15 : f32 to vector<16x128xf32>
      %21 = arith.mulf %17, %20 : vector<16x128xf32>
      %22 = arith.select %19, %17, %21 : vector<16x128xi1>, vector<16x128xf32>
      %c0_16 = arith.constant 0 : index
      %c0_17 = arith.constant 0 : index
      %23 = vector.load %arg6[%c0_16, %c0_17] : memref<16x128xf32, #tpu.memory_space<vmem>>, vector<16x128xf32>
      tpu.vector_store %arg6[%c0_16, %c0_17], %22 {strides = array<i32>} : memref<16x128xf32, #tpu.memory_space<vmem>>, vector<16x128xf32>,
    } else {
    }
    return
  }
  func.func @transform_0(%arg0: i32, %arg1: i32, %arg2: i32) -> (i32, i32) {
    %c0_i32 = arith.constant 0 : i32
    return %arg0, %arg2 : i32, i32
  }
  func.func @transform_1(%arg0: i32, %arg1: i32, %arg2: i32) -> (i32, i32) {
    %c0_i32 = arith.constant 0 : i32
    return %arg2, %arg1 : i32, i32
  }
  func.func @transform_2(%arg0: i32, %arg1: i32, %arg2: i32) -> (i32, i32) {
    %c0_i32 = arith.constant 0 : i32
    %c0_i32_0 = arith.constant 0 : i32
    return %c0_i32, %arg1 : i32, i32
  }
  func.func @transform_3(%arg0: i32, %arg1: i32, %arg2: i32) -> (i32, i32) {
    %c0_i32 = arith.constant 0 : i32
    return %arg0, %arg1 : i32, i32
  }
}

</mosaic_0001>

<bundles_post_ra>
// kernel: tpu_custom_call.1
= control target key start
LH: loop header
LB: loop body
LE: loop exit
PB: predicated region body
PF: predicated region fallthrough
CT: control target
= control target key end

     0   :  { %s1442_s0 = inlined_call_operand.hbm [shape: f32[16,384], index: 0, kind: input, shape index: {}]   ;;  %s1443_s1 = inlined_call_operand.hbm [shape: f32[384,384], index: 1, kind: input, shape index: {}]   ;;  %s1444_s2 = inlined_call_operand.vmem [shape: f32[1,384], index: 2, kind: input, shape index: {}]   ;;  %s1445_s3 = inlined_call_operand.hbm [shape: f32[16,384], index: 3, kind: output, shape index: {}]  }
   0x1   :  { %1459 = sst [smem:[#allocation17_spill]] %s1442_s0 }
   0x2   :  { %1460 = sst [smem:[#allocation18_spill]] %s1445_s3 }
   0x3   :  { %8 = vsyncpa [#allocation4], 0 }
   0x4   :  { %10 = vsyncpa [#allocation4 + $0x1], 0 }
   0x5   :  { %11 = vsyncpa [#allocation7], 0 }
   0x6   :  { %13 = vsyncpa [#allocation7 + $0x1], 0 }
   0x7   :  { %14 = vsyncpa [#allocation5], 0 }
   0x8   :  { %16 = vsyncpa [#allocation5 + $0x1], 0  ;;  %s1033_s12 = smov 0   ;;  %s1035_s13 = smov 0  }
   0x9   :  { %s1037_s14 = smov 0   ;;  %s1039_s15 = smov 0  }
   0xa   :  { %s1041_s16 = smov 0   ;;  %s1043_s17 = smov 0  }
   0xb   :  { %s1045_s18 = smov 0   ;;  %s1047_s19 = smov 0  }
   0xc   :  { %s1049_s20 = smov 0   ;;  %s1051_s21 = smov 0  }
   0xd   :  { %s1053_s22 = smov 0   ;;  %s1055_s23 = smov 0  }
   0xe   :  { %s1057_s24 = smov 0   ;;  %s1059_s25 = smov 0  }
   0xf LB: > { %1461 = sst [smem:[#allocation12_spill]] %s981_s20  ;;  %s546_s26 = sadd.s32 4294967295, %s1001_s25   ;;  %s1001_s25 = sphi %s1059_s25, %s22_s25   ;;  %s997_s24 = sphi %s1057_s24, %s1509_s24   ;;  %s993_s23 = sphi %s1055_s23, %s1508_s23   ;;  %s989_s22 = sphi %s1053_s22, %s1507_s22   ;;  %s985_s21 = sphi %s1051_s21, %s1506_s21   ;;  %s981_s20 = sphi %s1049_s20, %s1495_s20   ;;  %s977_s19 = sphi %s1047_s19, %s1505_s19   ;;  %s973_s18 = sphi %s1045_s18, %s1504_s18   ;;  %s969_s17 = sphi %s1043_s17, %s1503_s17   ;;  %s965_s16 = sphi %s1041_s16, %s1502_s16   ;;  %s961_s15 = sphi %s1039_s15, %s1501_s15   ;;  %s957_s14 = sphi %s1037_s14, %s1500_s14   ;;  %s953_s13 = sphi %s1035_s13, %s1499_s13   ;;  %s949_s12 = sphi %s1033_s12, %s1498_s12  }
  0x10   : > { %1462 = sst [smem:[#allocation13_spill]] %s985_s21  ;;  %s34_s27 = sadd.s32 1, %s993_s23 }
  0x11   : > { %p1103_p0 = scmp.ge.s32.totalorder %s34_s27, 3  ;;  %s50_s29 = sadd.s32 1, %s981_s20 }
  0x12   : > { %p57_p1 = scmp.ne.s32.totalorder %s981_s20, %s977_s19  ;;  %p1449_p2 = scmp.eq.s32.totalorder %s1001_s25, 0 }
  0x13   : > { %s1511_s27 = smov (%p1103_p0, %s34_s27), 0  ;;  %p63_p4 = scmp.ne.s32.totalorder %s977_s19, %s973_s18 }
  0x14   : > { %1464 = sst [smem:[#allocation14_spill]] %s1511_s27  ;;  %p1117_p3 = por %p1449_p2, %p57_p1 }
  0x15   : > { %s1124_s4 = ssub.s32 %s993_s23, %s1511_s27  ;;  %p1126_p5 = scmp.eq.s32.totalorder %s546_s26, 0 }
  0x16   : > { %p48_p6 = scmp.eq.s32.totalorder %s1124_s4, 0  ;;  %p1131_p7 = scmp.eq.s32.totalorder %s546_s26, 8 }
  0x17   : > { %s1466_s5 = scalar_select %p1126_p5, 1, 0 }
  0x18   : > { %s1467_s6 = scalar_select %p1131_p7, 1, 0 }
  0x19   : > { %p1137_p8 = por %p1126_p5, %p63_p4  ;;  %p1448_p9 = scmp.lt.s32.totalorder %s1001_s25, 9 }
  0x1a   : > { %s1142_s8 = scalar_select %p48_p6, %s981_s20, %s50_s29  }
  0x1b   : > { %s1468_s7 = scalar_select %p1137_p8, 1, 0 }
  0x1c   : > { %1469 = sst [smem:[#allocation15_spill]] %s1142_s8  ;;  %s169_s9 = sand.u32 1, %s981_s20  }
  0x1d   : > { %s550_s10 = sshll.u32 %s169_s9, 4  ;;  %s551_s11 = sshll.u32 %s993_s23, 7 }
  0x1e   : > { %s1470_s0 = sld [smem:[#allocation17_spill]]  ;;  %s173_s26 = scalar_lea.vmem [#allocation3], %s550_s10 }
  0x1f   : > { %s182_s21 = sshll.u32 %s173_s26, 4  ;;  %p1158_p10 = pnand %p1448_p9, %p1117_p3  ;;  %s1152_s21 = int_to_ptr.vmem [resolvable:$true] %s182_s21 }
  0x20   : > { %s1162_s8 = scalar_lea.sflag [#allocation4], %s169_s9 }
  0x21   : > { %p793_p12 = pneg %p1158_p10 }
  0x24   : > { %s1150_s3 = scalar_lea.hbm %s1470_s0, %s551_s11  ;;  %s796_s30 = scalar_lea.hbm %s1470_s0, 768 }
  0x25   : > { %s791_s27 = scalar_lea.hbm %s1150_s3, 256  ;;  %p797_p3 = scmp.lt.u32.totalorder %s1150_s3, %s1470_s0 }
  0x26   : > { %p792_p11 = scmp.ne.s32.totalorder %s1150_s3, %s791_s27  ;;  %p798_p4 = scmp.lt.u32.totalorder %s796_s30, %s791_s27 }
  0x27   : > { %p800_p9 = scmp.lt.u32.totalorder %s791_s27, %s1150_s3 }
  0x28   : > { %p794_p13 = pnand %p793_p12, %p792_p11  ;;  %p799_p6 = por %p798_p4, %p797_p3 }
  0x2a   : > { %p795_p1 = pneg %p794_p13  ;;  %p801_p2 = por %p800_p9, %p799_p6 }
  0x2c   : > { %p802_p8 = pnand %p801_p2, %p795_p1 }
  0x2e   : > { %805 = shalt.err (!%p802_p8)
}
  0x2f   : > { %s806_s9 = scalar_lea.vmem %s1152_s21, 256  ;;  %s1003_s10 = smov [#allocation3]  }
  0x30   : > { %p807_p11 = scmp.ne.s32.totalorder %s1152_s21, %s806_s9  ;;  %s811_s11 = sshll.u32 %s1003_s10, 4  ;;  %s812_s11 = int_to_ptr.vmem [resolvable:$false] %s811_s11 }
  0x31   : > { %s813_s18 = scalar_lea.vmem %s812_s11, 512  ;;  %p814_p5 = scmp.lt.s32.totalorder %s1152_s21, %s812_s11 }
  0x32   : > { %p809_p13 = pnand %p807_p11, %p793_p12  ;;  %p815_p3 = scmp.lt.s32.totalorder %s813_s18, %s806_s9 }
  0x34   : > { %p810_p7 = pneg %p809_p13  ;;  %p816_p4 = por %p815_p3, %p814_p5 }
  0x36   : > { %p817_p9 = pnand %p816_p4, %p810_p7 }
  0x38   : > { %820 = shalt.err (!%p817_p9)
}
  0x39   : > { %s1452_s27 = smov 384   ;;  %s1453_s30 = smov 128  }
  0x3a   : > { %s1454_s26 = smov 8   ;;  %p556_p2 = scmp.ge.s32.totalorder %s1001_s25, 1 }
  0x3b   : > { %662 = dma.hbm_to_vmem [thread:$0]  (!%p1158_p10), %s1150_s3, 256, %s1152_s21, %s1162_s8, %s1452_s27, %s1453_s30, %s1454_s26  }
  0x3c   : > { %p219_p5 = scmp.lt.s32.totalorder %s1001_s25, 10  ;;  %s547_s10 = sadd.s32 4294967294, %s1001_s25  }
  0x3d   : > { %s37_s11 = sadd.s32 1, %s997_s24  ;;  %s78_s18 = sadd.s32 1, %s969_s17 }
  0x3e   : > { %p1195_p7 = pnand %p556_p2, %p219_p5  ;;  %s1513_s11 = smov (!%p1103_p0, %s37_s11), %s997_s24 }
  0x3f   : > { %p85_p8 = scmp.ne.s32.totalorder %s969_s17, %s965_s16  ;;  %p91_p10 = scmp.ne.s32.totalorder %s965_s16, %s961_s15 }
  0x40   : > { %p39_p12 = scmp.ge.s32.totalorder %s1513_s11, 3  ;;  %s132_s3 = sadd.s32 1, %s957_s14 }
  0x41   : > { %p1473_p1 = scmp.eq.s32.totalorder %s1001_s25, 0  ;;  %p1475_p11 = scmp.ne.s32.totalorder %s1466_s5, 0 }
  0x42   : > { %s1515_s11 = smov (%p39_p12, %s1513_s11), 0  ;;  %p142_p0 = scmp.ne.s32.totalorder %s957_s14, %s953_s13 }
  0x43   : > { %p1212_p6 = por %p85_p8, %p1473_p1  ;;  %p1218_p13 = por %p91_p10, %p1475_p11 }
  0x44   : > { %1477 = sst [smem:[#allocation16_spill]] %s1515_s11  ;;  %p148_p3 = scmp.ne.s32.totalorder %s953_s13, %s949_s12 }
  0x45   : > { %s1476_s8 = scalar_select %p1218_p13, 1, 0 }
  0x46   : > { %s74_s15 = ssub.s32 %s997_s24, %s1515_s11  ;;  %p149_p4 = scmp.eq.s32.totalorder %s547_s10, 8 }
  0x47   : > { %s75_s28 = sor.u32 %s74_s15, %s1124_s4  ;;  %p130_p9 = scmp.eq.s32.totalorder %s74_s15, 0 }
  0x48   : > { %p76_p2 = scmp.eq.s32.totalorder %s75_s28, 0  ;;  %p1478_p5 = scmp.ne.s32.totalorder %s1467_s6, 0 }
  0x49   : > { %s1238_s29 = scalar_select %p130_p9, %s957_s14, %s132_s3  }
  0x4a   : > { %p1233_p8 = por %p1478_p5, %p142_p0  ;;  %p1243_p10 = por %p149_p4, %p148_p3 }
  0x4b   : > { %s1241_s27 = scalar_select %p76_p2, %s969_s17, %s78_s18  }
  0x4c   : > { %s1479_s5 = scalar_select %p1233_p8, 1, 0 }
  0x4d   : > { %s1480_s30 = scalar_select %p1243_p10, 1, 0 }
  0x4e   : > { %s192_s26 = sand.u32 1, %s969_s17   ;;  %s652_s11 = smul.u32 48, %s993_s23 }
  0x4f   : > { %s552_s0 = sshll.u32 %s192_s26, 7  ;;  %p1481_p12 = scmp.lt.s32.totalorder %s1001_s25, 9 }
  0x50   : > { %s196_s10 = scalar_lea.vmem [#allocation6], %s552_s0  ;;  %s202_s3 = sadd.s32 %s997_s24, %s652_s11 }
  0x51   : > { %s205_s4 = sshll.u32 %s196_s10, 4  ;;  %p1253_p1 = pnand %p1481_p12, %p1212_p6  ;;  %s1258_s4 = int_to_ptr.vmem [resolvable:$true] %s205_s4 }
  0x52   : > { %s555_s18 = sshll.u32 %s202_s3, 7  ;;  %s1265_s0 = scalar_lea.sflag [#allocation7], %s192_s26 }
  0x53   : > { %s1263_s20 = scalar_lea.hbm %s1443_s1, %s555_s18  ;;  %p823_p11 = pneg %p1253_p1 }
  0x54   : > { %s821_s21 = scalar_lea.hbm %s1263_s20, 2048  ;;  %s826_s3 = scalar_lea.hbm %s1443_s1, 18432 }
  0x55   : > { %p822_p6 = scmp.ne.s32.totalorder %s1263_s20, %s821_s21  ;;  %p827_p4 = scmp.lt.u32.totalorder %s1263_s20, %s1443_s1 }
  0x56   : > { %p828_p9 = scmp.lt.u32.totalorder %s826_s3, %s821_s21  ;;  %p830_p5 = scmp.lt.u32.totalorder %s821_s21, %s1263_s20 }
  0x57   : > { %p824_p0 = pnand %p823_p11, %p822_p6 }
  0x58   : > { %p829_p2 = por %p828_p9, %p827_p4 }
  0x59   : > { %p825_p3 = pneg %p824_p0 }
  0x5a   : > { %p831_p12 = por %p830_p5, %p829_p2 }
  0x5c   : > { %p832_p10 = pnand %p831_p12, %p825_p3 }
  0x5e   : > { %835 = shalt.err (!%p832_p10)
}
  0x5f   : > { %s836_s26 = scalar_lea.vmem %s1258_s4, 2048  ;;  %s1007_s28 = smov [#allocation6]  }
  0x60   : > { %p837_p6 = scmp.ne.s32.totalorder %s1258_s4, %s836_s26  ;;  %s841_s11 = sshll.u32 %s1007_s28, 4  ;;  %s842_s11 = int_to_ptr.vmem [resolvable:$false] %s841_s11 }
  0x61   : > { %s843_s10 = scalar_lea.vmem %s842_s11, 4096  ;;  %p844_p13 = scmp.lt.s32.totalorder %s1258_s4, %s842_s11 }
  0x62   : > { %p839_p0 = pnand %p837_p6, %p823_p11  ;;  %p845_p4 = scmp.lt.s32.totalorder %s843_s10, %s836_s26 }
  0x64   : > { %p840_p8 = pneg %p839_p0  ;;  %p846_p9 = por %p845_p4, %p844_p13 }
  0x66   : > { %p847_p2 = pnand %p846_p9, %p840_p8 }
  0x68   : > { %850 = shalt.err (!%p847_p2)
}
  0x69   : > { %s1483_s21 = smov 8   ;;  %s1484_s3 = smov 128  }
  0x6a   : > { %s1485_s18 = smov 384   ;;  %223 = sbr.rel (%p1195_p7) target bundleno = 428 (0x1ac), region = 32 }
  0x6b   : > { %665 = dma.hbm_to_vmem [thread:$0]  (!%p1253_p1), %s1263_s20, 2048, %s1258_s4, %s1265_s0, %s1485_s18, %s1484_s3, %s1483_s21  }
  0x6c   : > { %s225_s15 = sand.u32 (!%p1195_p7), 1, %s977_s19   ;;  %p1486_p13 = scmp.ne.s32.totalorder (!%p1195_p7), %s1468_s7, 0 }
  0x6d   : > { %s1299_s28 = sshll.u32 (!%p1195_p7), %s225_s15, 4  ;;  %s226_s26 = scalar_lea.sflag (!%p1195_p7), [#allocation4], %s225_s15 }
  0x6e   : > { %s229_s11 = scalar_lea.vmem (!%p1195_p7), [#allocation3], %s1299_s28 }
  0x71   : > { %936 = dma.done.wait (%p1486_p13), %s226_s26, 256  }
  0x72   : > { %938 = vsyncadd (%p1486_p13), %s226_s26, 4294967040  ;;  %s234_s6 = sand.u32 1, %s965_s16   ;;  %p1487_p7 = scmp.ne.s32.totalorder %s1476_s8, 0 }
  0x73   : > { %s558_s20 = sshll.u32 %s234_s6, 7  ;;  %s235_s4 = scalar_lea.sflag [#allocation7], %s234_s6 }
  0x74   : > { %s1307_s9 = scalar_lea.vmem [#allocation6], %s558_s20 }
  0x75   : > { %940 = dma.done.wait (%p1487_p7), %s235_s4, 2048  }
  0x76   : > { %942 = vsyncadd (%p1487_p7), %s235_s4, 4294965248  ;;  %s266_s0 = sand.u32 1, %s953_s13   ;;  %p271_p8 = scmp.lt.s32.totalorder %s989_s22, 2 }
  0x77   : > { %s559_s7 = sshll.u32 %s266_s0, 4  ;;  %s1488_s26 = sld [smem:[#allocation13_spill]] }
  0x78   : > { %s1318_s10 = scalar_select %p271_p8, %s989_s22, 2 }
  0x79   : > { %s1324_s15 = scalar_lea.vmem [#allocation8], %s559_s7 }
  0x7a   : > { %s273_s18 = scalar_lea.vmem %s1444_s2, %s1318_s10 }
  0x7d   : > { %p560_p10 = scmp.ne.s32.totalorder %s1488_s26, 0 }
  0x7e   : > { %v1008_v0 = vmov (!%p560_p10), 0.0  }
  0x7f   : > { %278 = sbr.rel (%p560_p10) target bundleno = 134 (0x86), region = 44  ;;  %279 = vst [vmem:[#allocation2] sm:$0xff] (!%p560_p10), %v1008_v0  ;;  %280 = vst [vmem:[#allocation2 + $0x8] sm:$0xff] (!%p560_p10), %v1008_v0 }
  0x86 PF: > { %v285_v1 = vld [vmem:[%s1307_s9] sm:$0xff]  ;;  %v286_v2 = vld [vmem:[%s1307_s9 + $0x8] sm:$0xff]  ;;  %v287_v3 = vld [vmem:[%s1307_s9 + $0x10] sm:$0xff]  ;;  %s1489_s8 = sld [smem:[#allocation13_spill]] }
  0x87   : > { %v620_v4 = vpack.c.bf16 %v286_v2, %v285_v1  ;;  %v288_v5 = vld [vmem:[%s1307_s9 + $0x18] sm:$0xff]  ;;  %v289_v7 = vld [vmem:[%s1307_s9 + $0x20] sm:$0xff]  ;;  %v290_v8 = vld [vmem:[%s1307_s9 + $0x28] sm:$0xff] }
  0x88   : > { %v624_v6 = vpack.c.bf16 %v288_v5, %v287_v3  ;;  %v628_v9 = vpack.c.bf16 %v290_v8, %v289_v7  ;;  %v283_v10 = vld [vmem:[%s229_s11] sm:$0xff]  ;;  %v292_v12 = vld [vmem:[%s1307_s9 + $0x38] sm:$0xff]  ;;  %v294_v15 = vld [vmem:[%s1307_s9 + $0x48] sm:$0xff] }
  0x89   : > { %621 = vmatprep.subr.bf16.mxu0 %v620_v4  ;;  %v291_v11 = vld [vmem:[%s1307_s9 + $0x30] sm:$0xff]  ;;  %617 = vmatprep.mubr.f32.mxu0 %v283_v10  ;;  %v293_v14 = vld [vmem:[%s1307_s9 + $0x40] sm:$0xff]  ;;  %v296_v18 = vld [vmem:[%s1307_s9 + $0x58] sm:$0xff] }
  0x8a   : > { %623 = vmatpush3.bf16.msra.mxu0 %v620_v4  ;;  %v632_v13 = vpack.c.bf16 %v292_v12, %v291_v11  ;;  %v636_v16 = vpack.c.bf16 %v294_v15, %v293_v14  ;;  %v295_v17 = vld [vmem:[%s1307_s9 + $0x50] sm:$0xff]  ;;  %v297_v20 = vld [vmem:[%s1307_s9 + $0x60] sm:$0xff]  ;;  %v298_v21 = vld [vmem:[%s1307_s9 + $0x68] sm:$0xff] }
  0x8b   : > { %625 = vmatprep.subr.bf16.mxu0 %v624_v6  ;;  %v640_v19 = vpack.c.bf16 %v296_v18, %v295_v17  ;;  %v644_v22 = vpack.c.bf16 %v298_v21, %v297_v20  ;;  %v299_v23 = vld [vmem:[%s1307_s9 + $0x70] sm:$0xff]  ;;  %v300_v24 = vld [vmem:[%s1307_s9 + $0x78] sm:$0xff] }
  0x8c   : > { %v648_v25 = vpack.c.bf16 %v300_v24, %v299_v23  ;;  %v284_v26 = vld [vmem:[%s229_s11 + $0x8] sm:$0xff]  ;;  %v281_v28 = vld [vmem:[#allocation2] sm:$0xff]  ;;  %p561_p1 = scmp.ne.s32.totalorder %s1489_s8, 2 }
  0x8d   : > { %v282_v27 = vld [vmem:[#allocation2 + $0x8] sm:$0xff]  ;;  %v562_v34 = vld [vmem:[%s273_s18] ss:$0 sm:$0xff] (!%p561_p1) }
  0x8e   : > { %627 = vmatpush3.bf16.msra.mxu0 %v624_v6 }
  0x8f   : > { %629 = vmatprep.subr.bf16.mxu0 %v628_v9 }
  0x92   : > { %631 = vmatpush3.bf16.msra.mxu0 %v628_v9 }
  0x93   : > { %633 = vmatprep.subr.bf16.mxu0 %v632_v13 }
  0x96   : > { %635 = vmatpush3.bf16.msra.mxu0 %v632_v13 }
  0x97   : > { %637 = vmatprep.subr.bf16.mxu0 %v636_v16 }
  0x9a   : > { %639 = vmatpush3.bf16.msra.mxu0 %v636_v16 }
  0x9b   : > { %641 = vmatprep.subr.bf16.mxu0 %v640_v19 }
  0x9e   : > { %643 = vmatpush3.bf16.msra.mxu0 %v640_v19 }
  0x9f   : > { %645 = vmatprep.subr.bf16.mxu0 %v644_v22 }
  0xa2   : > { %647 = vmatpush3.bf16.msra.mxu0 %v644_v22 }
  0xa3   : > { %649 = vmatprep.subr.bf16.mxu0 %v648_v25 }
  0xa6   : > { %651 = vmatpush3.bf16.msra.mxu0 %v648_v25 }
  0xa9   : > { %618 = vmatmul.mubr.f32.vlgmr.msra.gmra.mrb[0].mxu0 %v284_v26 }
 0x17a   : > { %383 = sbr.rel (%p561_p1) target bundleno = 400 (0x190), region = 48 }
 0x17c   : > { %v619_v29 = vpop.f32.mrb[0].mxu0 }
 0x17d   : > { %v377_v30 = vadd.f32 %v619_v29, %v282_v27  ;;  %v367_v31 = vpop.f32.mrb[1].mxu0 }
 0x17e   : > { %v376_v32 = vadd.f32 %v367_v31, %v281_v28 }
 0x17f   : > { %379 = vst [vmem:[#allocation2 + $0x8] sm:$0xff] %v377_v30 }
 0x180   : > { %378 = vst [vmem:[#allocation2] sm:$0xff] %v376_v32 }
 0x186   : > { %v385_v35 = vld [vmem:[#allocation2 + $0x8] sm:$0xff] }
 0x187   : > { %v384_v33 = vld [vmem:[#allocation2] sm:$0xff]  ;;  %v387_v37 = vmul.f32 0.0007905694, %v385_v35 }
 0x188   : > { %v386_v36 = vmul.f32 0.0007905694, %v384_v33 }
 0x189   : > { %v396_v39 = vadd.f32 %v562_v34, %v387_v37 }
 0x18a   : > { %v395_v38 = vadd.f32 %v562_v34, %v386_v36 }
 0x18b   : > { %vm398_vm1 = vcmp.ge.f32.partialorder %v396_v39, 0.0  ;;  %v400_v41 = vmul.f32 0.2, %v396_v39 }
 0x18c   : > { %vm397_vm0 = vcmp.ge.f32.partialorder %v395_v38, 0.0  ;;  %v399_v40 = vmul.f32 0.2, %v395_v38 }
 0x18d   : > { %v402_v43 = vsel %vm398_vm1, %v396_v39, %v400_v41 }
 0x18e   : > { %v401_v42 = vsel %vm397_vm0, %v395_v38, %v399_v40  ;;  %404 = vst [vmem:[%s1324_s15 + $0x8] sm:$0xff] %v402_v43 }
 0x18f   : > { %403 = vst [vmem:[%s1324_s15] sm:$0xff] %v401_v42 }
 0x190 PF: > { %s564_s28 = sshll.u32 %s989_s22, 7  ;;  %s1490_s9 = sld [smem:[#allocation18_spill]] }
 0x191   : > { %s421_s10 = sshll.u32 %s1324_s15, 4  ;;  %s1366_s21 = scalar_lea.sflag [#allocation5], %s266_s0  ;;  %s1362_s10 = int_to_ptr.vmem [resolvable:$true] %s421_s10 }
 0x192   : > { %s851_s3 = scalar_lea.vmem %s1362_s10, 256  ;;  %p1491_p3 = scmp.ne.s32.totalorder %s1479_s5, 0 }
 0x193   : > { %p852_p11 = scmp.ne.s32.totalorder %s1362_s10, %s851_s3  ;;  %s1009_s22 = smov [#allocation8]  }
 0x194   : > { %s855_s18 = sshll.u32 %s1009_s22, 4  ;;  %s856_s18 = int_to_ptr.vmem [resolvable:$false] %s855_s18 }
 0x195   : > { %p853_p5 = pnand %p852_p11, %p1491_p3  ;;  %s857_s26 = scalar_lea.vmem %s856_s18, 512 }
 0x196   : > { %s1359_s7 = scalar_lea.hbm %s1490_s9, %s564_s28  ;;  %p858_p6 = scmp.lt.s32.totalorder %s1362_s10, %s856_s18 }
 0x197   : > { %p854_p12 = pneg %p853_p5  ;;  %p859_p0 = scmp.lt.s32.totalorder %s857_s26, %s851_s3 }
 0x199   : > { %p860_p4 = por %p859_p0, %p858_p6 }
 0x19b   : > { %p861_p9 = pnand %p860_p4, %p854_p12 }
 0x19d   : > { %864 = shalt.err (!%p861_p9)
}
 0x19e   : > { %s865_s0 = scalar_lea.hbm %s1359_s7, 256  ;;  %s869_s6 = scalar_lea.hbm %s1490_s9, 768 }
 0x19f   : > { %p866_p2 = scmp.ne.s32.totalorder %s1359_s7, %s865_s0  ;;  %p870_p8 = scmp.lt.u32.totalorder %s1359_s7, %s1490_s9 }
 0x1a0   : > { %p871_p10 = scmp.lt.u32.totalorder %s869_s6, %s865_s0  ;;  %p873_p11 = scmp.lt.u32.totalorder %s865_s0, %s1359_s7 }
 0x1a1   : > { %p867_p13 = pnand %p866_p2, %p1491_p3 }
 0x1a2   : > { %p872_p1 = por %p871_p10, %p870_p8 }
 0x1a3   : > { %p868_p7 = pneg %p867_p13 }
 0x1a4   : > { %p874_p5 = por %p873_p11, %p872_p1 }
 0x1a6   : > { %p875_p12 = pnand %p874_p5, %p868_p7 }
 0x1a8   : > { %878 = shalt.err (!%p875_p12)
}
 0x1a9   : > { %s1010_s11 = smov 128   ;;  %s1011_s4 = smov 384  }
 0x1aa   : > { %s1012_s3 = smov 8  }
 0x1ab   : > { %657 = dma.vmem_to_hbm [thread:$0]  (%p1491_p3), %s1362_s10, 256, %s1359_s7, %s1366_s21, %s1010_s11, %s1011_s4, %s1012_s3  }
 0x1ac PF: > { %p671_p6 = scmp.ge.s32.totalorder %s1001_s25, 2  ;;  %s436_s22 = sand.u32 1, %s949_s12  }
 0x1ad   : > { %p1492_p0 = scmp.ne.s32.totalorder %s1480_s30, 0  ;;  %s437_s18 = scalar_lea.sflag [#allocation5], %s436_s22 }
 0x1af   : > { %p667_p4 = pnand %p671_p6, %p1492_p0 }
 0x1b1   : > { %944 = dma.done.wait (!%p667_p4), %s437_s18, 256  }
 0x1b2   : > { %946 = vsyncadd (!%p667_p4), %s437_s18, 4294967040  ;;  %s22_s25 = sadd.s32 1, %s1001_s25   ;;  %s1494_s5 = sld [smem:[#allocation12_spill]] }
 0x1b3   : > { %p1395_p9 = scmp.ge.s32.totalorder %s22_s25, 11   ;;  %s1495_s20 = sld [smem:[#allocation15_spill]] }
 0x1b4   : > { %s1496_s30 = sld [smem:[#allocation14_spill]]  ;;  %s1497_s7 = sld [smem:[#allocation16_spill]] }
 0x1b5   : > { %s1498_s12 = smov %s953_s13  ;;  %s1499_s13 = smov %s957_s14 }
 0x1b6   : > { %s1500_s14 = smov %s1238_s29  ;;  %s1501_s15 = smov %s965_s16 }
 0x1b7   : > { %s1502_s16 = smov %s969_s17  ;;  %s1503_s17 = smov %s1241_s27 }
 0x1b8   : > { %s1504_s18 = smov %s977_s19  ;;  %s1505_s19 = smov %s1494_s5 }
 0x1b9   : > { %s1506_s21 = smov %s993_s23  ;;  %s1507_s22 = smov %s997_s24 }
 0x1ba   : > { %s1508_s23 = smov %s1496_s30  ;;  %s1509_s24 = smov %s1497_s7 }
 0x1bb   :  { %21 = sbr.rel (!%p1395_p9) target bundleno = 15 (0xf), region = 101 }
 0x1c2   :  { %442 = vsyncpa [#allocation4], 1 }
 0x1c3   :  { %444 = vsyncpa [#allocation4 + $0x1], 1 }
 0x1c4   :  { %445 = vsyncpa [#allocation7], 1 }
 0x1c5   :  { %447 = vsyncpa [#allocation7 + $0x1], 1 }
 0x1c6   :  { %448 = vsyncpa [#allocation5], 1 }
 0x1c7   :  { %450 = vsyncpa [#allocation5 + $0x1], 1 }

</bundles_post_ra>
